<compile_context>
chip_gen: v7x
topology: tpu7x:2x2x1
jax: 0.10.0
libtpu: 0.0.40
codegen_flags: <defaults>
</compile_context>

<pallas_src>
import functools

import jax
import jax.numpy as jnp
import numpy as np
from jax import lax
from jax.experimental import pallas as pl
from jax.experimental.pallas import tpu as pltpu

_MIN_LANE_T = 128          # min trailing dim for the interior-axis (mid) kernel


# ------------------------------------------------------------------ weights ----

@functools.lru_cache(maxsize=32)
def _hilbert_matrix(n: int) -> np.ndarray:
    """Dense n x n complex128 Hilbert operator, built as a circulant (O(n log n))."""
    k = np.arange(n)
    f = np.concatenate(
        [np.arange(0, (n - 1) // 2 + 1, dtype=np.float64) / n,
         np.arange(-(n // 2), 0, dtype=np.float64) / n])
    u = np.where(f > 0, 1.0, np.where(f < 0, 0.0, 0.5))   # heaviside(f, 0.5)
    c = np.fft.ifft(2.0 * u)                              # first column of H
    return c[(k[:, None] - k[None, :]) % n]               # H[i, j] = c[(i-j) % n]


@functools.lru_cache(maxsize=32)
def _hilbert_weight(n: int, layout: str, dtype):
    """Fused real weight (device array, cached so repeated calls reuse it)."""
    H = _hilbert_matrix(n)
    if layout == "cols":        # x[rows, n] @ w[n, 2n], w = [Re(H)^T | Im(H)^T]
        w = np.concatenate([H.real.T, H.imag.T], axis=1)
    else:                       # w[2n, n] @ x[n, T],   w = [Re(H) ; Im(H)]
        w = np.concatenate([H.real, H.imag], axis=0)
    return jnp.asarray(w.astype(np.float32), dtype=dtype)


# ------------------------------------------------------------------ budgets ----

@functools.lru_cache(maxsize=1)
def _vmem_budgets():
    """(scoped vmem_limit_bytes, per-step tile budget) from the local chip."""
    cap = None
    try:
        info = pltpu.get_tpu_info()
        cap = int(getattr(info, "vmem_capacity_bytes", 0)) or None
    except Exception:
        cap = None
    if cap is None:
        cap = 64 * 1024 * 1024            # conservative (v7x per-core VMEM)
    vmem_limit = min(cap * 3 // 4, 100 * 1024 * 1024)
    tile_budget = vmem_limit // 2         # leave headroom for mosaic scratch
    return int(vmem_limit), int(tile_budget)


def _choose_tk(n, w_item, tile_budget, block_k=None):
    """Contraction block size. Returns (tk, k_tiled)."""
    if block_k is not None:
        tk = int(block_k)
        if 0 < tk < n and n % tk == 0:
            return tk, True
        return n, False
    w_full = 2 * n * n * w_item           # single-buffered resident weight
    if w_full <= tile_budget // 2:
        return n, False
    for tk in (1024, 512, 256, 128):      # must keep blocks lane/MXU aligned
        if n % tk == 0 and tk < n:
            return tk, True
    # TODO(synk): huge n not divisible by 128 would need masked K-edge handling;
    # fall back to the resident-weight path.
    return n, False


def _round_rows(t, total):
    if t >= total:
        return int(total)
    for q in (256, 128, 8):
        if t >= q:
            return int((t // q) * q)
    return 8


def _round_lanes(t, total):
    if t >= total:
        return int(total)
    return int(max(128, (t // 128) * 128))


# ------------------------------------------------------------------ kernels ----

def _rows_kernel(x_ref, w_ref, o_ref):
    # x:[ta, n] @ w:[n, 2n] -> o:[ta, 2n] (f32 accumulation on the MXU)
    o_ref[...] = jnp.dot(x_ref[...], w_ref[...],
                         preferred_element_type=jnp.float32)


def _rows_kernel_ktiled(x_ref, w_ref, o_ref, acc_ref):
    # K-tiled: x:[ta, tk] @ w:[tk, 2n], accumulate in f32 VMEM scratch.
    k = pl.program_id(1)

    @pl.when(k == 0)
    def _init():
        acc_ref[...] = jnp.zeros_like(acc_ref)

    acc_ref[...] += jnp.dot(x_ref[...], w_ref[...],
                            preferred_element_type=jnp.float32)

    @pl.when(k == pl.num_programs(1) - 1)
    def _finalize():
        o_ref[...] = acc_ref[...]


def _mid_kernel(w_ref, x_ref, o_ref):
    # w:[2n, n] @ x:[1, n, tt] -> o:[1, 2n, tt]
    o_ref[0] = jnp.dot(w_ref[...], x_ref[0],
                       preferred_element_type=jnp.float32)


def _mid_kernel_ktiled(w_ref, x_ref, o_ref, acc_ref):
    # K-tiled: w:[2n, tk] @ x:[1, tk, tt], accumulate in f32 VMEM scratch.
    k = pl.program_id(2)

    @pl.when(k == 0)
    def _init():
        acc_ref[...] = jnp.zeros_like(acc_ref)

    acc_ref[...] += jnp.dot(w_ref[...], x_ref[0],
                            preferred_element_type=jnp.float32)

    @pl.when(k == pl.num_programs(2) - 1)
    def _finalize():
        o_ref[0] = acc_ref[...]


# ----------------------------------------------------------------- wrappers ----

def _hilbert_last_axis(x2, w_cols, *, block_k=None):
    """x2: [R, n] real (transform axis last). Returns [R, 2n] f32 = [Re | Im]."""
    R, n = x2.shape
    two_n = 2 * n
    vmem_limit, tile_budget = _vmem_budgets()
    x_item = x2.dtype.itemsize
    w_item = w_cols.dtype.itemsize
    tk, k_tiled = _choose_tk(n, w_item, tile_budget, block_k)

    if k_tiled:
        w_bytes = 2 * tk * two_n * w_item                  # streamed, 2 buffers
    else:
        w_bytes = n * two_n * w_item                       # resident, 1 buffer
    per_row = 2 * tk * x_item + 2 * two_n * 4 + (two_n * 4 if k_tiled else 0)
    ta = _round_rows(max(8, (tile_budget - w_bytes) // per_row), R)

    cost = pl.CostEstimate(
        flops=2 * R * n * two_n, transcendentals=0,
        bytes_accessed=R * n * x_item + n * two_n * w_item + R * two_n * 4)
    out_shape = jax.ShapeDtypeStruct((R, two_n), jnp.float32)

    if not k_tiled:
        return pl.pallas_call(
            _rows_kernel,
            out_shape=out_shape,
            grid=(pl.cdiv(R, ta),),
            in_specs=[
                pl.BlockSpec((ta, n), lambda i: (i, 0)),
                pl.BlockSpec((n, two_n), lambda i: (0, 0),
                             pipeline_mode=pl.Buffered(1)),   # resident weight
            ],
            out_specs=pl.BlockSpec((ta, two_n), lambda i: (i, 0)),
            compiler_params=pltpu.CompilerParams(
                dimension_semantics=("parallel",),
                vmem_limit_bytes=vmem_limit),
            cost_estimate=cost,
        )(x2, w_cols)

    nk = n // tk
    return pl.pallas_call(
        _rows_kernel_ktiled,
        out_shape=out_shape,
        grid=(pl.cdiv(R, ta), nk),
        in_specs=[
            pl.BlockSpec((ta, tk), lambda i, k: (i, k)),
            pl.BlockSpec((tk, two_n), lambda i, k: (k, 0)),
        ],
        out_specs=pl.BlockSpec((ta, two_n), lambda i, k: (i, 0)),
        scratch_shapes=[pltpu.VMEM((ta, two_n), jnp.float32)],
        compiler_params=pltpu.CompilerParams(
            dimension_semantics=("parallel", "arbitrary"),
            vmem_limit_bytes=vmem_limit),
        cost_estimate=cost,
    )(x2, w_cols)


def _hilbert_mid_axis(x3, w_rows, *, block_k=None):
    """x3: [A, n, T] real, transform axis in the middle (T >= 128).
    Returns [A, 2n, T] f32 = [Re ; Im] stacked along the middle axis."""
    A, n, T = x3.shape
    two_n = 2 * n
    vmem_limit, tile_budget = _vmem_budgets()
    x_item = x3.dtype.itemsize
    w_item = w_rows.dtype.itemsize
    tk, k_tiled = _choose_tk(n, w_item, tile_budget, block_k)

    if k_tiled:
        w_bytes = 2 * two_n * tk * w_item
    else:
        w_bytes = two_n * n * w_item
    per_col = 2 * tk * x_item + 2 * two_n * 4 + (two_n * 4 if k_tiled else 0)
    tt = _round_lanes(max(128, (tile_budget - w_bytes) // per_col), T)

    cost = pl.CostEstimate(
        flops=2 * A * two_n * n * T, transcendentals=0,
        bytes_accessed=A * n * T * x_item + two_n * n * w_item + A * two_n * T * 4)
    out_shape = jax.ShapeDtypeStruct((A, two_n, T), jnp.float32)

    if not k_tiled:
        return pl.pallas_call(
            _mid_kernel,
            out_shape=out_shape,
            grid=(A, pl.cdiv(T, tt)),
            in_specs=[
                pl.BlockSpec((two_n, n), lambda a, t: (0, 0),
                             pipeline_mode=pl.Buffered(1)),   # resident weight
                pl.BlockSpec((1, n, tt), lambda a, t: (a, 0, t)),
            ],
            out_specs=pl.BlockSpec((1, two_n, tt), lambda a, t: (a, 0, t)),
            compiler_params=pltpu.CompilerParams(
                dimension_semantics=("parallel", "parallel"),
                vmem_limit_bytes=vmem_limit),
            cost_estimate=cost,
        )(w_rows, x3)

    nk = n // tk
    return pl.pallas_call(
        _mid_kernel_ktiled,
        out_shape=out_shape,
        grid=(A, pl.cdiv(T, tt), nk),
        in_specs=[
            pl.BlockSpec((two_n, tk), lambda a, t, k: (0, k)),
            pl.BlockSpec((1, tk, tt), lambda a, t, k: (a, k, t)),
        ],
        out_specs=pl.BlockSpec((1, two_n, tt), lambda a, t, k: (a, 0, t)),
        scratch_shapes=[pltpu.VMEM((two_n, tt), jnp.float32)],
        compiler_params=pltpu.CompilerParams(
            dimension_semantics=("parallel", "parallel", "arbitrary"),
            vmem_limit_bytes=vmem_limit),
        cost_estimate=cost,
    )(w_rows, x3)


# --------------------------------------------------------------- public API ----

def hilbert_transform(x, axis: int = 2, n=None, *, precision: str = "bfloat16",
                      block_k=None):
    """Analytic signal of real `x` along `axis` (complex64), MONAI semantics.

    precision: "bfloat16" (native MXU rate) or "float32" (exact path).
    block_k:   expert/testing knob to force the contraction block size
               (must divide n and be a multiple of 128).
    """
    x = jnp.asarray(x)
    if jnp.iscomplexobj(x):
        raise ValueError("x must be real.")
    x = x.astype(jnp.float32)
    if axis < 0 or axis > x.ndim - 1:
        raise ValueError("Invalid axis for shape of x.")
    size = x.shape[axis]
    n = size if n is None else int(n)
    if n <= 0:
        raise ValueError("N must be positive.")
    if n != size:
        # torch.fft.fft(n=...) crops / zero-pads along the transform axis
        if n < size:
            x = lax.slice_in_dim(x, 0, n, axis=axis)
        else:
            pad = [(0, 0)] * x.ndim
            pad[axis] = (0, n - size)
            x = jnp.pad(x, pad)
    if precision not in ("bfloat16", "float32"):
        raise ValueError("precision must be 'bfloat16' or 'float32'.")
    cdtype = jnp.bfloat16 if precision == "bfloat16" else jnp.float32

    out_shape = x.shape
    A = int(np.prod(out_shape[:axis], dtype=np.int64))
    T = int(np.prod(out_shape[axis + 1:], dtype=np.int64))

    if T >= _MIN_LANE_T:
        # Interior axis with a lane-dense trailing dim: contract the middle dim
        # directly ( [2n,n] @ [n,T] per leading index ), no transpose.
        w_rows = _hilbert_weight(n, "rows", cdtype)
        out3 = _hilbert_mid_axis(x.astype(cdtype).reshape(A, n, T), w_rows,
                                 block_k=block_k)            # [A, 2n, T] f32
        ht = lax.complex(out3[:, :n, :], out3[:, n:, :]).reshape(out_shape)
    elif T > 1:
        # Trailing dims too small for unmasked lane-dense stores: move the
        # transform axis last (cheap XLA transpose for these shapes) and use the
        # row-tiled kernel whose [rows, 2n] output slab is lane dense.
        w_cols = _hilbert_weight(n, "cols", cdtype)
        xm = jnp.moveaxis(x, axis, -1)
        out2 = _hilbert_last_axis(xm.astype(cdtype).reshape(A * T, n), w_cols,
                                  block_k=block_k)           # [A*T, 2n] f32
        ht = lax.complex(out2[:, :n], out2[:, n:]).reshape(xm.shape)
        ht = jnp.moveaxis(ht, -1, axis)
    else:
        # Transform axis is (effectively) the last axis: plain reshape, no copy.
        w_cols = _hilbert_weight(n, "cols", cdtype)
        out2 = _hilbert_last_axis(x.astype(cdtype).reshape(A, n), w_cols,
                                  block_k=block_k)           # [A, 2n] f32
        ht = lax.complex(out2[:, :n], out2[:, n:]).reshape(out_shape)
    return ht


# ------------------------------------------------------------------- main ----

if __name__ == "__main__":
    key = jax.random.PRNGKey(0)
    k0, k1, k2 = jax.random.split(key, 3)

    def ref_hilbert(x, axis):
        n = x.shape[axis]
        f = np.concatenate([np.arange(0, (n - 1) // 2 + 1, dtype=np.float64) / n,
                            np.arange(-(n // 2), 0, dtype=np.float64) / n])
        u = np.where(f > 0, 1.0, np.where(f < 0, 0.0, 0.5))
        shape = [1] * x.ndim
        shape[axis] = n
        xf = jnp.fft.fft(x.astype(jnp.complex64), axis=axis)
        return jnp.fft.ifft(xf * jnp.asarray(2.0 * u).reshape(shape), axis=axis)

    # [Batch, chns, spatial1, spatial2] -- module's canonical layout.
    x = jax.random.normal(k0, (2, 4, 16, 16), dtype=jnp.float32)

    # 1) module default: axis=2 (first spatial dim), bf16 MXU path.
    ht = jax.block_until_ready(hilbert_transform(x, axis=2))
    assert ht.shape == x.shape and ht.dtype == jnp.complex64
    np.testing.assert_allclose(np.asarray(ht), np.asarray(ref_hilbert(x, 2)),
                               rtol=3e-2, atol=3e-2)

    # 2) exact float32 MXU path.
    ht32 = jax.block_until_ready(hilbert_transform(x, axis=2, precision="float32"))
    np.testing.assert_allclose(np.asarray(ht32), np.asarray(ref_hilbert(x, 2)),
                               rtol=1e-3, atol=1e-3)

    # 3) last-axis path.
    ht3 = jax.block_until_ready(hilbert_transform(x, axis=3))
    assert ht3.shape == x.shape and ht3.dtype == jnp.complex64
    np.testing.assert_allclose(np.asarray(ht3), np.asarray(ref_hilbert(x, 3)),
                               rtol=3e-2, atol=3e-2)

    # 4) interior axis with a lane-dense (>=128) trailing dim -> mid-axis kernel.
    xb = jax.random.normal(k1, (2, 3, 32, 128), dtype=jnp.float32)
    htb = jax.block_until_ready(hilbert_transform(xb, axis=2))
    np.testing.assert_allclose(np.asarray(htb), np.asarray(ref_hilbert(xb, 2)),
                               rtol=3e-2, atol=3e-2)

    # 5) K-tiled accumulator paths (forced small block_k to exercise them).
    xk = jax.random.normal(k2, (2, 2, 256, 128), dtype=jnp.float32)
    htk = jax.block_until_ready(hilbert_transform(xk, axis=2, block_k=128))
    np.testing.assert_allclose(np.asarray(htk), np.asarray(ref_hilbert(xk, 2)),
                               rtol=3e-2, atol=3e-2)
    xr = jnp.swapaxes(xk, 2, 3)                      # [2, 2, 128, 256], axis=3
    htr = jax.block_until_ready(hilbert_transform(xr, axis=3, block_k=128))
    np.testing.assert_allclose(np.asarray(htr), np.asarray(ref_hilbert(xr, 3)),
                               rtol=3e-2, atol=3e-2)

    print("KERNEL_OK")
</pallas_src>

<mosaic_0001>
module attributes {stable_mosaic.version = 11 : i64} {
  func.func @_rows_kernel(%arg0: i32, %arg1: memref<128x16xbf16, #tpu.memory_space<vmem>>, %arg2: memref<16x32xbf16, #tpu.memory_space<vmem>>, %arg3: memref<128x32xf32, #tpu.memory_space<vmem>>) attributes {dimension_semantics = [#tpu.dimension_semantics<parallel>], iteration_bounds = array<i64: 1>, scalar_prefetch = 0 : i64, scratch_operands = 0 : i64, tpu.core_type = #tpu.core_type<tc>, window_params = [{transform_indices = @transform_0, window_bounds = array<i64: 128, 16>}, {pipeline_mode = #tpu.pipeline_mode<synchronous>, transform_indices = @transform_1, window_bounds = array<i64: 16, 32>}, {transform_indices = @transform_2, window_bounds = array<i64: 128, 32>}]} {
    %c0 = arith.constant 0 : index
    %c0_0 = arith.constant 0 : index
    %0 = vector.load %arg1[%c0, %c0_0] : memref<128x16xbf16, #tpu.memory_space<vmem>>, vector<128x16xbf16>
    %c0_1 = arith.constant 0 : index
    %c0_2 = arith.constant 0 : index
    %1 = vector.load %arg2[%c0_1, %c0_2] : memref<16x32xbf16, #tpu.memory_space<vmem>>, vector<16x32xbf16>
    %cst = arith.constant dense<0.000000e+00> : vector<128x32xf32>
    %2 = tpu.matmul %0, %1, %cst {dimension_numbers = #tpu.dot_dimension_numbers<[1], [0], [0], [1], [0, 0, 1, 1], [], []>} : vector<128x16xbf16>, vector<16x32xbf16>, vector<128x32xf32> -> vector<128x32xf32>
    %c0_3 = arith.constant 0 : index
    %c0_4 = arith.constant 0 : index
    %3 = vector.load %arg3[%c0_3, %c0_4] : memref<128x32xf32, #tpu.memory_space<vmem>>, vector<128x32xf32>
    tpu.vector_store %arg3[%c0_3, %c0_4], %2 {strides = array<i32>} : memref<128x32xf32, #tpu.memory_space<vmem>>, vector<128x32xf32>,
    return
  }
  func.func @transform_0(%arg0: i32) -> (i32, i32) {
    %c0_i32 = arith.constant 0 : i32
    %c0_i32_0 = arith.constant 0 : i32
    return %arg0, %c0_i32 : i32, i32
  }
  func.func @transform_1(%arg0: i32) -> (i32, i32) {
    %c0_i32 = arith.constant 0 : i32
    %c0_i32_0 = arith.constant 0 : i32
    %c0_i32_1 = arith.constant 0 : i32
    return %c0_i32, %c0_i32_0 : i32, i32
  }
  func.func @transform_2(%arg0: i32) -> (i32, i32) {
    %c0_i32 = arith.constant 0 : i32
    %c0_i32_0 = arith.constant 0 : i32
    return %arg0, %c0_i32 : i32, i32
  }
}

</mosaic_0001>

<bundles_post_ra>
// kernel: tpu_custom_call.1
= control target key start
LH: loop header
LB: loop body
LE: loop exit
PB: predicated region body
PF: predicated region fallthrough
CT: control target
= control target key end

     0   :  { %vm76_vm0 = vcmask 130048   ;;  %vm198_vm1 = vcmask 261120   ;;  %s388_s1 = inlined_call_operand.vmem [shape: bf16[16,32], index: 1, kind: input, shape index: {}]   ;;  %s389_s0 = inlined_call_operand.vmem [shape: bf16[128,16], index: 0, kind: input, shape index: {}]   ;;  %s390_s2 = inlined_call_operand.vmem [shape: f32[128,32], index: 2, kind: output, shape index: {}]  }
   0x1   :  { %v265_v0 = vld [vmem:[%s388_s1] sm:$0xff]   ;;  %v268_v3 = vld [vmem:[%s389_s0 + $0x8] sm:$0xff]   ;;  %v270_v5 = vld [vmem:[%s389_s0 + $0x10] sm:$0xff]  }
   0x2   :  { %v266_v1 = vld [vmem:[%s389_s0] sm:$0xff]   ;;  %245 = vmatprep.subr.bf16.mxu0 %v265_v0  ;;  %263 = vmatprep.subr.bf16.mxu1 %v265_v0  ;;  %v269_v4 = vld [vmem:[%s389_s0 + $0x28] sm:$0xff]   ;;  %v271_v6 = vld [vmem:[%s389_s0 + $0x30] sm:$0xff]  }
   0x3   :  { %v267_v2 = vld [vmem:[%s389_s0 + $0x20] sm:$0xff]   ;;  %246 = vmatpush3.bf16.msra.mxu0 %v265_v0  ;;  %264 = vmatpush3.bf16.msra.mxu1 %v265_v0  ;;  %v272_v7 = vld [vmem:[%s389_s0 + $0x18] sm:$0xff]  }
   0x4   :  { %247 = vmatprep.mubr.msk.bf16.mxu0 %vm76_vm0, %v266_v1  ;;  %255 = vmatprep.mubr.msk.bf16.mxu1 %vm76_vm0, %v267_v2  ;;  %v273_v8 = vld [vmem:[%s389_s0 + $0x38] sm:$0xff]  }
   0x6   :  { %248 = vmatmul.mubr.msk.bf16.vlgmr.msra.gmra.mrb[0].mxu0 %vm76_vm0, %v268_v3  ;;  %256 = vmatmul.mubr.msk.bf16.vlgmr.msra.gmra.mrb[0].mxu1 %vm76_vm0, %v269_v4 }
   0x7   :  { %251 = vmatprep.mubr.msk.bf16.mxu0 %vm76_vm0, %v270_v5  ;;  %259 = vmatprep.mubr.msk.bf16.mxu1 %vm76_vm0, %v271_v6 }
   0xe   :  { %252 = vmatmul.mubr.msk.bf16.gmra.mrb[4].mxu0 %vm76_vm0, %v272_v7  ;;  %260 = vmatmul.mubr.msk.bf16.gmra.mrb[4].mxu1 %vm76_vm0, %v273_v8 }
  0xd9   :  { %v249_v9 = vpop.f32.mrb[0].mxu0  ;;  %v257_v10 = vpop.f32.mrb[0].mxu1 }
  0xda   :  { %201 = vst.msk [vmem:[%s390_s2 + $0x10] sm:$0xff] %vm198_vm1, %v249_v9  ;;  %209 = vst.msk [vmem:[%s390_s2 + $0x50] sm:$0xff] %vm198_vm1, %v257_v10  ;;  %v135_v11 = vpop.f32.mrb[1].mxu0  ;;  %v167_v12 = vpop.f32.mrb[1].mxu1 }
  0xdb   :  { %199 = vst.msk [vmem:[%s390_s2] sm:$0xff] %vm198_vm1, %v135_v11  ;;  %207 = vst.msk [vmem:[%s390_s2 + $0x40] sm:$0xff] %vm198_vm1, %v167_v12  ;;  %v250_v13 = vpop.f32.mrb[2].mxu0  ;;  %v258_v14 = vpop.f32.mrb[2].mxu1 }
  0xdc   :  { %202 = vst.msk [vmem:[%s390_s2 + $0x18] sm:$0xff] %vm198_vm1, %v250_v13  ;;  %210 = vst.msk [vmem:[%s390_s2 + $0x58] sm:$0xff] %vm198_vm1, %v258_v14  ;;  %v138_v15 = vpop.f32.mrb[3].mxu0  ;;  %v170_v16 = vpop.f32.mrb[3].mxu1 }
  0xdd   :  { %200 = vst.msk [vmem:[%s390_s2 + $0x8] sm:$0xff] %vm198_vm1, %v138_v15  ;;  %208 = vst.msk [vmem:[%s390_s2 + $0x48] sm:$0xff] %vm198_vm1, %v170_v16 }
  0xe1   :  { %v253_v17 = vpop.f32.mrb[4].mxu0  ;;  %v261_v18 = vpop.f32.mrb[4].mxu1 }
  0xe2   :  { %205 = vst.msk [vmem:[%s390_s2 + $0x30] sm:$0xff] %vm198_vm1, %v253_v17  ;;  %213 = vst.msk [vmem:[%s390_s2 + $0x70] sm:$0xff] %vm198_vm1, %v261_v18  ;;  %v151_v19 = vpop.f32.mrb[5].mxu0  ;;  %v183_v20 = vpop.f32.mrb[5].mxu1 }
  0xe3   :  { %203 = vst.msk [vmem:[%s390_s2 + $0x20] sm:$0xff] %vm198_vm1, %v151_v19  ;;  %211 = vst.msk [vmem:[%s390_s2 + $0x60] sm:$0xff] %vm198_vm1, %v183_v20  ;;  %v254_v21 = vpop.f32.mrb[6].mxu0  ;;  %v262_v22 = vpop.f32.mrb[6].mxu1 }
  0xe4   :  { %206 = vst.msk [vmem:[%s390_s2 + $0x38] sm:$0xff] %vm198_vm1, %v254_v21  ;;  %214 = vst.msk [vmem:[%s390_s2 + $0x78] sm:$0xff] %vm198_vm1, %v262_v22  ;;  %v154_v23 = vpop.f32.mrb[7].mxu0  ;;  %v186_v24 = vpop.f32.mrb[7].mxu1 }
  0xe5   :  { %204 = vst.msk [vmem:[%s390_s2 + $0x28] sm:$0xff] %vm198_vm1, %v154_v23  ;;  %212 = vst.msk [vmem:[%s390_s2 + $0x68] sm:$0xff] %vm198_vm1, %v186_v24 }

</bundles_post_ra>
